<compile_context>
chip_gen: v5e
topology: v5e:2x2
jax: 0.10.0
libtpu: 0.0.40
codegen_flags: <defaults>
</compile_context>

<pallas_src>
import functools

import jax
import jax.numpy as jnp
from jax.experimental import pallas as pl
from jax.experimental.pallas import tpu as pltpu


def _round_up(v, m):
    return (v + m - 1) // m * m


# ---------------------------------------------------------------------------
# Fused single-block kernel (small inputs: x resident in VMEM, one HBM read).
# ---------------------------------------------------------------------------
def _fused_kernel(x_ref, rm_ref, rvmf_ref,
                  out_ref, new_rm_ref, rv_out_ref, mf_out_ref,
                  *, n_rows, n_feat, norm_scale_factor, bn_momentum, bn_eps):
    x = x_ref[...].astype(jnp.float32)                        # (Np, Fp), single cast

    # One streaming pass: per-feature sum and sum of squares (padded lanes/rows
    # are zero, so they contribute nothing; divide by the true N, F below).
    sum_f = jnp.sum(x, axis=0, keepdims=True)                 # (1, Fp)
    sumsq_f = jnp.sum(x * x, axis=0, keepdims=True)           # (1, Fp)

    mean = sum_f * (1.0 / n_rows)                             # (1, Fp)
    total_sumsq = jnp.sum(sumsq_f, axis=1, keepdims=True)     # (1, 1)
    total_meansq = jnp.sum(mean * mean, axis=1, keepdims=True)
    var = (total_sumsq - n_rows * total_meansq) * (1.0 / (n_rows * n_feat))

    rm = rm_ref[...]                                           # (1, Fp)
    rv = rvmf_ref[0]                                           # SMEM scalar
    mf = rvmf_ref[1]                                           # SMEM scalar

    new_rm = rm + (1.0 - bn_momentum) * (mean - rm)
    new_rv = rv + (1.0 - bn_momentum) * (var - rv)             # (1, 1)
    new_mf = mf * bn_momentum                                  # scalar

    correction = 1.0 / (1.0 - new_mf + bn_eps)                 # scalar
    inv_std = jax.lax.rsqrt(correction * (new_rv + bn_eps))    # (1, 1)

    # Fold into a per-feature affine: out = a * x + b  (2 VPU ops / element).
    a = norm_scale_factor * inv_std                            # (1, 1)
    b = -a * (correction * new_rm)                             # (1, Fp)
    out_ref[...] = (a * x + b).astype(out_ref.dtype)

    new_rm_ref[...] = new_rm
    rv_out_ref[...] = jnp.broadcast_to(new_rv, rv_out_ref.shape)
    mf_out_ref[...] = jnp.full(mf_out_ref.shape, new_mf, jnp.float32)


# ---------------------------------------------------------------------------
# Phase 1 (tiled): streaming sum/sumsq accumulation -> affine coefficients.
# ---------------------------------------------------------------------------
def _stats_kernel(x_ref, rm_ref, rvmf_ref,
                  new_rm_ref, a_ref, b_ref, rv_out_ref, mf_out_ref,
                  sum_acc, sumsq_acc,
                  *, n_rows, n_feat, norm_scale_factor, bn_momentum, bn_eps):
    i = pl.program_id(0)

    @pl.when(i == 0)
    def _init():
        sum_acc[...] = jnp.zeros_like(sum_acc)
        sumsq_acc[...] = jnp.zeros_like(sumsq_acc)

    x = x_ref[...].astype(jnp.float32)                         # (TILE_N, Fp)
    sum_acc[...] += jnp.sum(x, axis=0, keepdims=True)
    sumsq_acc[...] += jnp.sum(x * x, axis=0, keepdims=True)

    @pl.when(i == pl.num_programs(0) - 1)
    def _finalize():
        mean = sum_acc[...] * (1.0 / n_rows)
        total_sumsq = jnp.sum(sumsq_acc[...], axis=1, keepdims=True)
        total_meansq = jnp.sum(mean * mean, axis=1, keepdims=True)
        var = (total_sumsq - n_rows * total_meansq) * (1.0 / (n_rows * n_feat))

        rm = rm_ref[...]
        rv = rvmf_ref[0]
        mf = rvmf_ref[1]
        new_rm = rm + (1.0 - bn_momentum) * (mean - rm)
        new_rv = rv + (1.0 - bn_momentum) * (var - rv)
        new_mf = mf * bn_momentum

        correction = 1.0 / (1.0 - new_mf + bn_eps)
        inv_std = jax.lax.rsqrt(correction * (new_rv + bn_eps))
        a = norm_scale_factor * inv_std                        # (1, 1)
        b = -a * (correction * new_rm)                         # (1, Fp)

        new_rm_ref[...] = new_rm
        a_ref[...] = jnp.broadcast_to(a, a_ref.shape)
        b_ref[...] = b
        rv_out_ref[...] = jnp.broadcast_to(new_rv, rv_out_ref.shape)
        mf_out_ref[...] = jnp.full(mf_out_ref.shape, new_mf, jnp.float32)


# ---------------------------------------------------------------------------
# Phase 2 (tiled): lane-dense per-feature affine, out = a * x + b.
# ---------------------------------------------------------------------------
def _affine_kernel(x_ref, a_ref, b_ref, out_ref):
    x = x_ref[...].astype(jnp.float32)
    out_ref[...] = (a_ref[...] * x + b_ref[...]).astype(out_ref.dtype)


def reps_batch_norm(x, running_mean, running_var, missing_fraction, *,
                    norm_scale_factor=0.4, bn_momentum=0.9, bn_eps=1e-8,
                    small_path_max_bytes=4 * 1024 * 1024):
    """Training-mode forward of RepsBatchNorm.

    Returns (normalized_x, new_running_mean, new_running_var,
             new_missing_fraction); buffers are carried functionally (PyTorch
    mutates them in place).
    """
    n, f = x.shape
    itemsize = jnp.dtype(x.dtype).itemsize
    sub = 8 * max(1, 4 // itemsize)          # sublane packing: 8 (f32) / 16 (bf16)
    f_pad = _round_up(f, 128)                # lane-dense feature axis

    rm = jnp.asarray(running_mean, jnp.float32).reshape(1, f)
    if f_pad != f:
        rm = jnp.pad(rm, ((0, 0), (0, f_pad - f)))
    rvmf = jnp.stack([
        jnp.asarray(running_var, jnp.float32).reshape(()),
        jnp.asarray(missing_fraction, jnp.float32).reshape(()),
    ])                                        # (2,) f32 -> SMEM

    kernel_consts = dict(
        n_rows=int(n), n_feat=int(f),
        norm_scale_factor=float(norm_scale_factor),
        bn_momentum=float(bn_momentum), bn_eps=float(bn_eps))

    smem_spec = pl.BlockSpec(memory_space=pltpu.MemorySpace.SMEM)
    vec_spec = pl.BlockSpec((1, f_pad), lambda i: (0, 0))
    s128_spec = pl.BlockSpec((1, 128), lambda i: (0, 0))

    n_small = _round_up(n, sub)
    use_small = (n_small * f_pad * itemsize) <= small_path_max_bytes

    if use_small:
        # --- fused single-block path (x resident in VMEM) -------------------
        n_pad = n_small
        x_p = x
        if n_pad != n or f_pad != f:
            x_p = jnp.pad(x, ((0, n_pad - n), (0, f_pad - f)))

        out_p, new_rm, rv_out, mf_out = pl.pallas_call(
            functools.partial(_fused_kernel, **kernel_consts),
            grid=(1,),
            in_specs=[
                pl.BlockSpec((n_pad, f_pad), lambda i: (0, 0)),
                vec_spec,
                smem_spec,
            ],
            out_specs=(
                pl.BlockSpec((n_pad, f_pad), lambda i: (0, 0)),
                vec_spec,
                s128_spec,
                s128_spec,
            ),
            out_shape=(
                jax.ShapeDtypeStruct((n_pad, f_pad), x.dtype),
                jax.ShapeDtypeStruct((1, f_pad), jnp.float32),
                jax.ShapeDtypeStruct((1, 128), jnp.float32),
                jax.ShapeDtypeStruct((1, 128), jnp.float32),
            ),
            input_output_aliases={1: 1},      # running_mean updated "in place"
            compiler_params=pltpu.CompilerParams(
                dimension_semantics=("arbitrary",),
                vmem_limit_bytes=32 * 1024 * 1024),
        )(x_p, rm, rvmf)
    else:
        # --- tiled two-phase streaming path ---------------------------------
        # Row tile sized for ~2 MiB of x per buffer: safe with double-buffered
        # input+output on every generation (incl. v7x's 64 MiB physical VMEM).
        target_tile_bytes = 2 * 1024 * 1024
        tile_n = (target_tile_bytes // (f_pad * itemsize)) // sub * sub
        tile_n = max(sub, min(512, _round_up(n, sub), tile_n))
        n_pad = _round_up(n, tile_n)
        x_p = x
        if n_pad != n or f_pad != f:
            x_p = jnp.pad(x, ((0, n_pad - n), (0, f_pad - f)))
        num_tiles = n_pad // tile_n

        x_spec = pl.BlockSpec((tile_n, f_pad), lambda i: (i, 0))

        # Phase 1: accumulate sum/sumsq, emit folded affine coefficients.
        new_rm, a_vec, b_vec, rv_out, mf_out = pl.pallas_call(
            functools.partial(_stats_kernel, **kernel_consts),
            grid=(num_tiles,),
            in_specs=[x_spec, vec_spec, smem_spec],
            out_specs=(vec_spec, vec_spec, vec_spec, s128_spec, s128_spec),
            out_shape=(
                jax.ShapeDtypeStruct((1, f_pad), jnp.float32),  # new running_mean
                jax.ShapeDtypeStruct((1, f_pad), jnp.float32),  # a (broadcast)
                jax.ShapeDtypeStruct((1, f_pad), jnp.float32),  # b
                jax.ShapeDtypeStruct((1, 128), jnp.float32),    # new running_var
                jax.ShapeDtypeStruct((1, 128), jnp.float32),    # new missing_fraction
            ),
            scratch_shapes=[
                pltpu.VMEM((1, f_pad), jnp.float32),            # sum accumulator
                pltpu.VMEM((1, f_pad), jnp.float32),            # sumsq accumulator
            ],
            input_output_aliases={1: 0},      # running_mean updated "in place"
            compiler_params=pltpu.CompilerParams(
                dimension_semantics=("arbitrary",),
                vmem_limit_bytes=32 * 1024 * 1024),
        )(x_p, rm, rvmf)

        # Phase 2: elementwise affine; row tiles parallel across TensorCores.
        out_p = pl.pallas_call(
            _affine_kernel,
            grid=(num_tiles,),
            in_specs=[x_spec, vec_spec, vec_spec],
            out_specs=pl.BlockSpec((tile_n, f_pad), lambda i: (i, 0)),
            out_shape=jax.ShapeDtypeStruct((n_pad, f_pad), x.dtype),
            compiler_params=pltpu.CompilerParams(
                dimension_semantics=("parallel",),
                vmem_limit_bytes=32 * 1024 * 1024),
        )(x_p, a_vec, b_vec)

    out = out_p[:n, :f]
    new_running_mean = new_rm[0, :f]
    new_running_var = rv_out[0, 0]
    new_missing_fraction = mf_out[0, 0]
    return out, new_running_mean, new_running_var, new_missing_fraction


def _reference(x, rm, rv, mf, *, norm_scale_factor=0.4, bn_momentum=0.9,
               bn_eps=1e-8):
    x = x.astype(jnp.float32)
    mean = jnp.mean(x, axis=0)
    var = jnp.mean((x - mean[None, :]) ** 2)
    rm = rm + (1.0 - bn_momentum) * (mean - rm)
    rv = rv + (1.0 - bn_momentum) * (var - rv)
    mf = mf * bn_momentum
    cf = 1.0 / (1.0 - mf + bn_eps)
    out = norm_scale_factor * (x - cf * rm) / jnp.sqrt(cf * (rv + bn_eps))
    return out, rm, rv, mf


if __name__ == "__main__":
    key = jax.random.PRNGKey(0)
    k0, k1, k2 = jax.random.split(key, 3)

    # --- Case 1: small shape -> fused single-block path (x resident in VMEM).
    n_features, n_samples = 32, 8
    x = jax.random.normal(k0, (n_samples, n_features), dtype=jnp.float32)
    running_mean = jnp.zeros((n_features,), jnp.float32)   # torch.zeros(n_features)
    running_var = jnp.asarray(0.0, jnp.float32)            # torch.as_tensor(0.0)
    missing_fraction = jnp.asarray(1.0, jnp.float32)       # torch.as_tensor(1.0)

    out, nrm, nrv, nmf = reps_batch_norm(
        x, running_mean, running_var, missing_fraction)
    jax.block_until_ready((out, nrm, nrv, nmf))

    r_out, r_rm, r_rv, r_mf = _reference(
        x, running_mean, running_var, missing_fraction)
    assert jnp.allclose(out, r_out, atol=1e-4, rtol=1e-4)
    assert jnp.allclose(nrm, r_rm, atol=1e-5, rtol=1e-5)
    assert jnp.allclose(nrv, r_rv, atol=1e-5, rtol=1e-5)
    assert jnp.allclose(nmf, r_mf, atol=1e-6, rtol=1e-6)

    # --- Case 2: ragged shape, force the tiled two-phase streaming path.
    n2, f2 = 1200, 96                      # exercises row/feature padding
    x2 = jax.random.normal(k1, (n2, f2), dtype=jnp.float32)
    rm2 = 0.05 * jax.random.normal(k2, (f2,), dtype=jnp.float32)
    rv2 = jnp.asarray(0.3, jnp.float32)
    mf2 = jnp.asarray(0.7, jnp.float32)

    out2, nrm2, nrv2, nmf2 = reps_batch_norm(
        x2, rm2, rv2, mf2, small_path_max_bytes=0)   # force tiled path
    jax.block_until_ready((out2, nrm2, nrv2, nmf2))

    r_out2, r_rm2, r_rv2, r_mf2 = _reference(x2, rm2, rv2, mf2)
    assert jnp.allclose(out2, r_out2, atol=1e-4, rtol=1e-4)
    assert jnp.allclose(nrm2, r_rm2, atol=1e-5, rtol=1e-5)
    assert jnp.allclose(nrv2, r_rv2, atol=1e-5, rtol=1e-5)
    assert jnp.allclose(nmf2, r_mf2, atol=1e-6, rtol=1e-6)

    print("KERNEL_OK")
</pallas_src>

<mosaic_0001>
module attributes {stable_mosaic.version = 11 : i64} {
  func.func @_fused_kernel(%arg0: i32, %arg1: memref<8x128xf32, #tpu.memory_space<vmem>>, %arg2: memref<1x128xf32, #tpu.memory_space<vmem>>, %arg3: memref<2xf32, #tpu.memory_space<smem>>, %arg4: memref<8x128xf32, #tpu.memory_space<vmem>>, %arg5: memref<1x128xf32, #tpu.memory_space<vmem>>, %arg6: memref<1x128xf32, #tpu.memory_space<vmem>>, %arg7: memref<1x128xf32, #tpu.memory_space<vmem>>) attributes {dimension_semantics = [#tpu.dimension_semantics<arbitrary>], iteration_bounds = array<i64: 1>, scalar_prefetch = 0 : i64, scratch_operands = 0 : i64, tpu.core_type = #tpu.core_type<tc>, window_params = [{pipeline_mode = #tpu.pipeline_mode<synchronous>, transform_indices = @transform_0, window_bounds = array<i64: 8, 128>}, {pipeline_mode = #tpu.pipeline_mode<synchronous>, transform_indices = @transform_1, window_bounds = array<i64: 1, 128>}, {transform_indices = @transform_2, window_bounds = array<i64: 2>}, {pipeline_mode = #tpu.pipeline_mode<synchronous>, transform_indices = @transform_3, window_bounds = array<i64: 8, 128>}, {pipeline_mode = #tpu.pipeline_mode<synchronous>, transform_indices = @transform_4, window_bounds = array<i64: 1, 128>}, {pipeline_mode = #tpu.pipeline_mode<synchronous>, transform_indices = @transform_5, window_bounds = array<i64: 1, 128>}, {pipeline_mode = #tpu.pipeline_mode<synchronous>, transform_indices = @transform_6, window_bounds = array<i64: 1, 128>}]} {
    %c0 = arith.constant 0 : index
    %c0_0 = arith.constant 0 : index
    %0 = vector.load %arg1[%c0, %c0_0] : memref<8x128xf32, #tpu.memory_space<vmem>>, vector<8x128xf32>
    %cst = arith.constant dense<0.000000e+00> : vector<128xf32>
    %1 = vector.multi_reduction <add>, %0, %cst [0] : vector<8x128xf32> to vector<128xf32>
    %2 = vector.shape_cast %1 : vector<128xf32> to vector<1x128xf32>
    %3 = arith.mulf %0, %0 : vector<8x128xf32>
    %cst_1 = arith.constant dense<0.000000e+00> : vector<128xf32>
    %4 = vector.multi_reduction <add>, %3, %cst_1 [0] : vector<8x128xf32> to vector<128xf32>
    %5 = vector.shape_cast %4 : vector<128xf32> to vector<1x128xf32>
    %cst_2 = arith.constant 1.250000e-01 : f32
    %6 = vector.broadcast %cst_2 : f32 to vector<1x128xf32>
    %7 = arith.mulf %2, %6 : vector<1x128xf32>
    %cst_3 = arith.constant dense<0.000000e+00> : vector<1xf32>
    %8 = vector.multi_reduction <add>, %5, %cst_3 [1] : vector<1x128xf32> to vector<1xf32>
    %9 = vector.shape_cast %8 : vector<1xf32> to vector<1x1xf32>
    %10 = arith.mulf %7, %7 : vector<1x128xf32>
    %cst_4 = arith.constant dense<0.000000e+00> : vector<1xf32>
    %11 = vector.multi_reduction <add>, %10, %cst_4 [1] : vector<1x128xf32> to vector<1xf32>
    %12 = vector.shape_cast %11 : vector<1xf32> to vector<1x1xf32>
    %cst_5 = arith.constant 8.000000e+00 : f32
    %13 = vector.broadcast %cst_5 : f32 to vector<1x1xf32>
    %14 = arith.mulf %13, %12 : vector<1x1xf32>
    %15 = arith.subf %9, %14 : vector<1x1xf32>
    %cst_6 = arith.constant 3.906250e-03 : f32
    %16 = vector.broadcast %cst_6 : f32 to vector<1x1xf32>
    %17 = arith.mulf %15, %16 : vector<1x1xf32>
    %c0_7 = arith.constant 0 : index
    %c0_8 = arith.constant 0 : index
    %18 = vector.load %arg2[%c0_7, %c0_8] : memref<1x128xf32, #tpu.memory_space<vmem>>, vector<1x128xf32>
    %c0_9 = arith.constant 0 : index
    %19 = memref.load %arg3[%c0_9] : memref<2xf32, #tpu.memory_space<smem>>
    %c1 = arith.constant 1 : index
    %20 = memref.load %arg3[%c1] : memref<2xf32, #tpu.memory_space<smem>>
    %21 = arith.subf %7, %18 : vector<1x128xf32>
    %cst_10 = arith.constant 1.000000e-01 : f32
    %22 = vector.broadcast %cst_10 : f32 to vector<1x128xf32>
    %23 = arith.mulf %22, %21 : vector<1x128xf32>
    %24 = arith.addf %18, %23 : vector<1x128xf32>
    %25 = vector.broadcast %19 : f32 to vector<1x1xf32>
    %26 = arith.subf %17, %25 : vector<1x1xf32>
    %cst_11 = arith.constant 1.000000e-01 : f32
    %27 = vector.broadcast %cst_11 : f32 to vector<1x1xf32>
    %28 = arith.mulf %27, %26 : vector<1x1xf32>
    %29 = vector.broadcast %19 : f32 to vector<1x1xf32>
    %30 = arith.addf %29, %28 : vector<1x1xf32>
    %cst_12 = arith.constant 0.899999976 : f32
    %31 = arith.mulf %20, %cst_12 : f32
    %cst_13 = arith.constant 1.000000e+00 : f32
    %32 = arith.subf %cst_13, %31 : f32
    %cst_14 = arith.constant 9.99999993E-9 : f32
    %33 = arith.addf %32, %cst_14 : f32
    %cst_15 = arith.constant 1.000000e+00 : f32
    %34 = arith.divf %cst_15, %33 : f32
    %cst_16 = arith.constant 9.99999993E-9 : f32
    %35 = vector.broadcast %cst_16 : f32 to vector<1x1xf32>
    %36 = arith.addf %30, %35 : vector<1x1xf32>
    %37 = vector.broadcast %34 : f32 to vector<1x1xf32>
    %38 = arith.mulf %37, %36 : vector<1x1xf32>
    %39 = math.rsqrt %38 : vector<1x1xf32>
    %cst_17 = arith.constant 4.000000e-01 : f32
    %40 = vector.broadcast %cst_17 : f32 to vector<1x1xf32>
    %41 = arith.mulf %40, %39 : vector<1x1xf32>
    %cst_18 = arith.constant 0.000000e+00 : f32
    %42 = vector.broadcast %cst_18 : f32 to vector<1x1xf32>
    %43 = arith.subf %42, %41 : vector<1x1xf32>
    %44 = vector.broadcast %34 : f32 to vector<1x128xf32>
    %45 = arith.mulf %44, %24 : vector<1x128xf32>
    %46 = vector.broadcast %43 : vector<1x1xf32> to vector<1x128xf32>
    %47 = arith.mulf %46, %45 : vector<1x128xf32>
    %48 = vector.broadcast %41 : vector<1x1xf32> to vector<8x128xf32>
    %49 = arith.mulf %48, %0 : vector<8x128xf32>
    %50 = vector.broadcast %47 : vector<1x128xf32> to vector<8x128xf32>
    %51 = arith.addf %49, %50 : vector<8x128xf32>
    %c0_19 = arith.constant 0 : index
    %c0_20 = arith.constant 0 : index
    %52 = vector.load %arg4[%c0_19, %c0_20] : memref<8x128xf32, #tpu.memory_space<vmem>>, vector<8x128xf32>
    tpu.vector_store %arg4[%c0_19, %c0_20], %51 {strides = array<i32>} : memref<8x128xf32, #tpu.memory_space<vmem>>, vector<8x128xf32>,
    %c0_21 = arith.constant 0 : index
    %c0_22 = arith.constant 0 : index
    %53 = vector.load %arg5[%c0_21, %c0_22] : memref<1x128xf32, #tpu.memory_space<vmem>>, vector<1x128xf32>
    tpu.vector_store %arg5[%c0_21, %c0_22], %24 {strides = array<i32>} : memref<1x128xf32, #tpu.memory_space<vmem>>, vector<1x128xf32>,
    %54 = vector.shape_cast %30 : vector<1x1xf32> to vector<1x1xf32>
    %55 = vector.broadcast %54 : vector<1x1xf32> to vector<1x128xf32>
    %c0_23 = arith.constant 0 : index
    %c0_24 = arith.constant 0 : index
    %56 = vector.load %arg6[%c0_23, %c0_24] : memref<1x128xf32, #tpu.memory_space<vmem>>, vector<1x128xf32>
    tpu.vector_store %arg6[%c0_23, %c0_24], %55 {strides = array<i32>} : memref<1x128xf32, #tpu.memory_space<vmem>>, vector<1x128xf32>,
    %57 = vector.broadcast %31 : f32 to vector<1x128xf32>
    %c0_25 = arith.constant 0 : index
    %c0_26 = arith.constant 0 : index
    %58 = vector.load %arg7[%c0_25, %c0_26] : memref<1x128xf32, #tpu.memory_space<vmem>>, vector<1x128xf32>
    tpu.vector_store %arg7[%c0_25, %c0_26], %57 {strides = array<i32>} : memref<1x128xf32, #tpu.memory_space<vmem>>, vector<1x128xf32>,
    return
  }
  func.func @transform_0(%arg0: i32) -> (i32, i32) {
    %c0_i32 = arith.constant 0 : i32
    %c0_i32_0 = arith.constant 0 : i32
    %c0_i32_1 = arith.constant 0 : i32
    return %c0_i32, %c0_i32_0 : i32, i32
  }
  func.func @transform_1(%arg0: i32) -> (i32, i32) {
    %c0_i32 = arith.constant 0 : i32
    %c0_i32_0 = arith.constant 0 : i32
    %c0_i32_1 = arith.constant 0 : i32
    return %c0_i32, %c0_i32_0 : i32, i32
  }
  func.func @transform_2(%arg0: i32) -> i32 {
    %c0_i32 = arith.constant 0 : i32
    %c0_i32_0 = arith.constant 0 : i32
    return %c0_i32 : i32
  }
  func.func @transform_3(%arg0: i32) -> (i32, i32) {
    %c0_i32 = arith.constant 0 : i32
    %c0_i32_0 = arith.constant 0 : i32
    %c0_i32_1 = arith.constant 0 : i32
    return %c0_i32, %c0_i32_0 : i32, i32
  }
  func.func @transform_4(%arg0: i32) -> (i32, i32) {
    %c0_i32 = arith.constant 0 : i32
    %c0_i32_0 = arith.constant 0 : i32
    %c0_i32_1 = arith.constant 0 : i32
    return %c0_i32, %c0_i32_0 : i32, i32
  }
  func.func @transform_5(%arg0: i32) -> (i32, i32) {
    %c0_i32 = arith.constant 0 : i32
    %c0_i32_0 = arith.constant 0 : i32
    %c0_i32_1 = arith.constant 0 : i32
    return %c0_i32, %c0_i32_0 : i32, i32
  }
  func.func @transform_6(%arg0: i32) -> (i32, i32) {
    %c0_i32 = arith.constant 0 : i32
    %c0_i32_0 = arith.constant 0 : i32
    %c0_i32_1 = arith.constant 0 : i32
    return %c0_i32, %c0_i32_0 : i32, i32
  }
}

</mosaic_0001>

<bundles_post_ra>
// kernel: tpu_custom_call.1
= control target key start
LH: loop header
LB: loop body
LE: loop exit
PB: predicated region body
PF: predicated region fallthrough
CT: control target
= control target key end

     0   :  { %12 = vsyncpa [#allocation3], 0  ;;  %s466_s0 = inlined_call_operand.hbm [shape: f32[8,128], index: 0, kind: input, shape index: {}]   ;;  %s467_s1 = inlined_call_operand.hbm [shape: f32[1,128], index: 1, kind: input, shape index: {}, may-alias: {1,4}]   ;;  %s468_s2 = inlined_call_operand.vmem [shape: f32[2], index: 2, kind: input, shape index: {}]   ;;  %s469_s3 = inlined_call_operand.hbm [shape: f32[8,128], index: 3, kind: output, shape index: {0}]   ;;  %s470_s4 = inlined_call_operand.hbm [shape: f32[1,128], index: 4, kind: output, shape index: {1}, may-alias: {1,4}]   ;;  %s471_s5 = inlined_call_operand.hbm [shape: f32[1,128], index: 5, kind: output, shape index: {2}]   ;;  %s472_s6 = inlined_call_operand.hbm [shape: f32[1,128], index: 6, kind: output, shape index: {3}]  }
   0x1   :  { %13 = vsyncpa [#allocation7], 0 }
   0x2   :  { %14 = vsyncpa [#allocation5], 0 }
   0x3   :  { %15 = vsyncpa [#allocation4], 0 }
   0x4   :  { %16 = vsyncpa [#allocation11], 0 }
   0x5   :  { %17 = vsyncpa [#allocation14], 0  ;;  %s23_s23 = sshll.u32 %s466_s0, 4  ;;  %s389_s24 = smov [#allocation2]   ;;  %s24_s23 = int_to_ptr.hbm [resolvable:$true] %s23_s23 }
   0x6   :  { %s25_s25 = sshll.u32 %s389_s24, 4  ;;  %s34_s28 = sshll.u32 %s467_s1, 4  ;;  %s26_s25 = int_to_ptr.vmem [resolvable:$true] %s25_s25  ;;  %s35_s28 = int_to_ptr.hbm [resolvable:$true] %s34_s28 }
   0x7   :  { %28 = dma.hbm_to_vmem [thread:$0]  %s24_s23, 128, %s26_s25, [#allocation3]  }
   0x8   :  { %s390_s29 = smov [#allocation6]   ;;  %s45_s9 = sshll.u32 %s468_s2, 4  ;;  %s46_s9 = int_to_ptr.vmem [resolvable:$true] %s45_s9 }
   0x9   :  { %s36_s30 = sshll.u32 %s390_s29, 4  ;;  %s391_s0 = smov [#allocation8]   ;;  %s37_s30 = int_to_ptr.vmem [resolvable:$true] %s36_s30 }
   0xa   :  { %39 = dma.hbm_to_vmem [thread:$0]  %s35_s28, 16, %s37_s30, [#allocation7]  }
   0xb   :  { %48 = dma.vmem_to_smem %s46_s9, 16, %s391_s0, [#allocation5]  }
   0xc   :  { %377 = dma.done.wait [#allocation3], 128  }
   0xd   :  { %378 = vsyncadd [#allocation3], 4294967168 }
   0xe   :  { %379 = dma.done.wait [#allocation7], 16  }
   0xf   :  { %380 = vsyncadd [#allocation7], 4294967280 }
  0x10   :  { %381 = dma.done.wait [#allocation5], 16  }
  0x11   :  { %382 = vsyncadd [#allocation5], 4294967280 }
  0x12   :  { %61 = sfence }
  0x13   :  { %v440_v0 = vld [vmem:[#allocation2] sm:$0xff]  ;;  %s442_s1 = sld [smem:[#allocation8 + $0x1]]  ;;  %v85_v27 = vld [vmem:[#allocation6] sm:$0x1]  ;;  %s392_s12 = smov [#allocation10]  }
  0x14   :  { %v63_v1 = vrot.slane %v440_v0, 4  ;;  %v69_v2 = vmul.f32 %v440_v0, %v440_v0  ;;  %s157_s13 = sshll.u32 %s392_s12, 4  ;;  %s159_s16 = sshll.u32 %s470_s4, 4  ;;  %s158_s13 = int_to_ptr.vmem [resolvable:$true] %s157_s13  ;;  %s160_s16 = int_to_ptr.hbm [resolvable:$true] %s159_s16 }
  0x15   :  { %s86_s17 = sld [smem:[#allocation8]]  ;;  %s170_s20 = sshll.u32 %s471_s5, 4  ;;  %s171_s20 = int_to_ptr.hbm [resolvable:$true] %s170_s20 }
  0x16   :  { %v64_v3 = vadd.f32 %v63_v1, %v440_v0  ;;  %v70_v4 = vrot.slane %v69_v2, 4  ;;  %s393_s4 = smov [#allocation12]   ;;  %s394_s22 = smov [#allocation13]  }
  0x17   :  { %s168_s21 = sshll.u32 %s393_s4, 4  ;;  %s179_s23 = sshll.u32 %s394_s22, 4  ;;  %s169_s21 = int_to_ptr.vmem [resolvable:$true] %s168_s21  ;;  %s180_s23 = int_to_ptr.vmem [resolvable:$true] %s179_s23 }
  0x18   :  { %v65_v5 = vrot.slane %v64_v3, 2  ;;  %v71_v6 = vadd.f32 %v70_v4, %v69_v2  ;;  %s181_s27 = sshll.u32 %s472_s6, 4  ;;  %s395_s5 = smov [#allocation9]   ;;  %s182_s27 = int_to_ptr.hbm [resolvable:$true] %s181_s27 }
  0x19   :  { %s95_s2 = smul.f32 0.9, %s442_s1  ;;  %s146_s6 = sshll.u32 %s395_s5, 4  ;;  %s147_s6 = int_to_ptr.vmem [resolvable:$true] %s146_s6 }
  0x1a   :  { %v66_v7 = vadd.f32 %v65_v5, %v64_v3  ;;  %v72_v9 = vrot.slane %v71_v6, 2  ;;  %s148_s30 = sshll.u32 %s469_s3, 4  ;;  %s149_s30 = int_to_ptr.hbm [resolvable:$true] %s148_s30 }
  0x1b   :  { %s96_s10 = ssub.f32 1.0, %s95_s2  ;;  %v91_v35 = vstv %s86_s17  ;;  %v139_v41 = vstv %s95_s2 }
  0x1c   :  { %v67_v8 = vrot.slane %v66_v7, 1  ;;  %v73_v13 = vadd.f32 %v72_v9, %v71_v6  ;;  %140 = vst [vmem:[#allocation13] sm:$0x1] %v139_v41 }
  0x1d   :  { %s97_s11 = sadd.f32 1e-08, %s96_s10 }
  0x1e   :  { %v68_v10 = vadd.f32 %v67_v8, %v66_v7  ;;  %v74_v15 = vrot.slane %v73_v13, 1  ;;  %184 = dma.vmem_to_hbm [thread:$0]  %s180_s23, 16, %s182_s27, [#allocation14]  }
  0x1f   :  { %v98_v11 = vstv %s97_s11 }
  0x20   :  { %v76_v12 = vmul.f32 0.125, %v68_v10  ;;  %217 = vrcp.f32 %v98_v11  ;;  %v75_v18 = vadd.f32 %v74_v15, %v73_v13  ;;  %v110_v19 = vand.u32 2147483648, %v98_v11 }
  0x21   :  { %vm104_vm0 = vweird.f32 %v98_v11  ;;  %v108_v21 = vand.u32 2147483647, %v98_v11 }
  0x22   :  { %v79_v14 = vmul.f32 %v76_v12, %v76_v12  ;;  %v111_v23 = vor.u32 1.1754944e-38, %v110_v19  ;;  %v88_v28 = vsub.f32 %v76_v12, %v85_v27 }
  0x23   :  { %vm109_vm3 = vcmp.eq.f32.partialorder %v108_v21, 8.507059e+37 }
  0x24   :  { %80 = vadd.xlane.f32.xlu0 %v79_v14  ;;  %v89_v29 = vmul.f32 0.1, %v88_v28 }
  0x26   :  { %v218_v16 = vpop.eup %217  ;;  %v90_v30 = vadd.f32 %v89_v29, %v85_v27 }
  0x27   :  { %v100_v17 = vmul.f32 %v218_v16, %v98_v11  ;;  %vm105_vm1 = vweird.f32 %v218_v16 }
  0x28   :  { %vm106_vm2 = vmor %vm104_vm0, %vm105_vm1  ;;  %137 = vst [vmem:[#allocation10] sm:$0x1] %v90_v30 }
  0x29   :  { %v101_v20 = vsub.f32 1.0, %v100_v17  ;;  %162 = dma.vmem_to_hbm [thread:$0]  %s158_s13, 16, %s160_s16, [#allocation11]  }
  0x2b   :  { %v102_v22 = vmul.f32 %v218_v16, %v101_v20 }
  0x2c   :  { %77 = vadd.xlane.f32.xlu0 %v75_v18 }
  0x2d   :  { %v103_v24 = vadd.f32 %v218_v16, %v102_v22 }
  0x2f   :  { %v107_v25 = vsel %vm106_vm2, %v218_v16, %v103_v24 }
  0x30   :  { %v112_v26 = vsel %vm109_vm3, %v111_v23, %v107_v25 }
  0x31   :  { %208 = vpush %v112_v26 }
  0x62   :  { %s209_s24 = spop %208 }
  0x63   :  { %v115_v40 = vstv %s209_s24 }
  0x64   :  { %v129_v53 = vmul.f32 %v115_v40, %v90_v30 }
  0x97   :  { %v81_v31 = vpop.xlane.xlu0 %80 }
  0x98   :  { %v82_v32 = vmul.f32 8.0, %v81_v31 }
  0x9f   :  { %v78_v33 = vpop.xlane.xlu0 %77 }
  0xa0   :  { %v83_v34 = vsub.f32 %v78_v33, %v82_v32 }
  0xa2   :  { %v84_v36 = vmul.f32 0.00390625, %v83_v34 }
  0xa4   :  { %v92_v37 = vsub.f32 %v84_v36, %v91_v35 }
  0xa6   :  { %v93_v38 = vmul.f32 0.1, %v92_v37 }
  0xa8   :  { %v94_v39 = vadd.f32 %v93_v38, %v91_v35 }
  0xaa   :  { %v114_v42 = vadd.f32 1e-08, %v94_v39  ;;  %138 = vst [vmem:[#allocation12] sm:$0x1] %v94_v39 }
  0xab   :  { %173 = dma.vmem_to_hbm [thread:$0]  %s169_s21, 16, %s171_s20, [#allocation11]  }
  0xac   :  { %v116_v43 = vmul.f32 %v115_v40, %v114_v42 }
  0xae   :  { %219 = vrsqrt.f32 %v116_v43  ;;  %vm123_vm5 = vweird.f32 %v116_v43 }
  0xb4   :  { %v220_v44 = vpop.eup %219 }
  0xb5   :  { %v118_v45 = vmul.f32 %v220_v44, %v116_v43  ;;  %vm124_vm4 = vweird.f32 %v220_v44 }
  0xb6   :  { %vm125_vm6 = vmor %vm123_vm5, %vm124_vm4 }
  0xb7   :  { %v119_v46 = vmul.f32 %v220_v44, %v118_v45 }
  0xb9   :  { %v120_v47 = vmul.f32 0.5, %v119_v46 }
  0xbb   :  { %v121_v48 = vsub.f32 1.5, %v120_v47 }
  0xbd   :  { %v122_v49 = vmul.f32 %v220_v44, %v121_v48 }
  0xbf   :  { %v126_v50 = vsel %vm125_vm6, %v220_v44, %v122_v49 }
  0xc0   :  { %v127_v51 = vmul.f32 0.4, %v126_v50 }
  0xc2   :  { %v128_v52 = vsub.f32 0.0, %v127_v51  ;;  %v131_v56 = vmul.f32 %v127_v51, %v440_v0 }
  0xc4   :  { %v130_v54 = vmul.f32 %v129_v53, %v128_v52 }
  0xc6   :  { %v133_v55 = vperm.slane %v130_v54, 0 }
  0xc8   :  { %v135_v57 = vadd.f32 %v133_v55, %v131_v56 }
  0xca   :  { %136 = vst [vmem:[#allocation9] sm:$0xff] %v135_v57 }
  0xcb   :  { %151 = dma.vmem_to_hbm [thread:$0]  %s147_s6, 128, %s149_s30, [#allocation4]  }
  0xcc   :  { %383 = dma.done.wait [#allocation4], 128  }
  0xcd   :  { %384 = vsyncadd [#allocation4], 4294967168 }
  0xce   :  { %385 = dma.done.wait [#allocation11], 32  }
  0xcf   :  { %386 = vsyncadd [#allocation11], 4294967264 }
  0xd0   :  { %387 = dma.done.wait [#allocation14], 16  }
  0xd1   :  { %388 = vsyncadd [#allocation14], 4294967280 }
  0xd2   :  { %201 = vsyncpa [#allocation3], 1 }
  0xd3   :  { %202 = vsyncpa [#allocation7], 1 }
  0xd4   :  { %203 = vsyncpa [#allocation4], 1 }
  0xd5   :  { %204 = vsyncpa [#allocation11], 1 }
  0xd6   :  { %205 = vsyncpa [#allocation14], 1 }
  0xd7   :  { %206 = vsyncpa [#allocation5], 1 }

</bundles_post_ra>
